<compile_context>
chip_gen: v7x
topology: tpu7x:2x2x1
jax: 0.10.0
libtpu: 0.0.40
codegen_flags: <defaults>
</compile_context>

<pallas_src>
import jax
import jax.numpy as jnp
from jax.experimental import pallas as pl
from jax.experimental.pallas import tpu as pltpu

# ---------------------------------------------------------------------------
# Model hyper-parameters (nn_arch = {'neurons': H, 'layers': N_LAYERS})
# ---------------------------------------------------------------------------
H = 32          # nn_arch['neurons']
N_LAYERS = 2    # nn_arch['layers']
OUT_DIM = 3     # N, T, I
OUT_SUB = 8     # output rows padded 3 -> 8 sublanes (lane axis stays dense)
TILE_N = 512    # collocation points per grid step (lane axis)


def _silu(x):
    # SiLU(x) = x * sigmoid(x) = 0.5 * x * (1 + tanh(0.5 * x))
    # (single EUP tanh push; no exp + exact divide)
    return 0.5 * x * (1.0 + jnp.tanh(0.5 * x))


def _mlp_kernel(t_ref, w0_ref, b0_ref, wh_ref, bh_ref, wo_ref, bo_ref, out_ref):
    """Points-on-lanes MLP forward for one TILE_N-wide tile.

    t_ref  : (1, TILE_N)                         time points (lane axis)
    w0_ref : (H, 1),  b0_ref : (H, 1)            first Linear (1 -> H), (out, in)
    wh_ref : (N_LAYERS, H, H), bh_ref: (N_LAYERS, H, 1)   hidden Linears, (out, in)
    wo_ref : (OUT_SUB, H), bo_ref: (OUT_SUB, 1)  output Linear, zero-padded 3 -> 8 rows
    out_ref: (OUT_SUB, TILE_N)
    """
    t = t_ref[...]                                       # (1, TILE_N)

    # First layer Linear(1, H): contraction dim is 1 -> pure broadcast multiply.
    h = w0_ref[...] * t + b0_ref[...]                    # (H, TILE_N)
    h = _silu(h)

    # Hidden layers: Linear(H, H) + SiLU, statically unrolled.
    for l in range(N_LAYERS):
        h = jnp.dot(wh_ref[l], h, preferred_element_type=jnp.float32) + bh_ref[l]
        h = _silu(h)

    # Output layer: Linear(H, 3) padded to 8 sublanes; lanes stay dense.
    out_ref[...] = (
        jnp.dot(wo_ref[...], h, preferred_element_type=jnp.float32) + bo_ref[...]
    )


@jax.jit
def pinn_ode_forward(t, params):
    """Forward pass of PINN_ODE.solution_network.

    t: (N, 1) float32 input points.
    params: dict of weights (see init_params).
    Returns (N, 3) float32 solution [N, T, I].
    """
    n = t.shape[0]
    n_pad = pl.cdiv(n, TILE_N) * TILE_N
    # Transpose to points-on-lanes and zero-pad the tail tile (finite inputs ->
    # finite garbage outputs; sliced away below, so no NaN propagation risk).
    t_t = jnp.pad(t.astype(jnp.float32).T, ((0, 0), (0, n_pad - n)))  # (1, n_pad)

    const2 = lambda i: (0, 0)
    const3 = lambda i: (0, 0, 0)

    out_t = pl.pallas_call(
        _mlp_kernel,
        out_shape=jax.ShapeDtypeStruct((OUT_SUB, n_pad), jnp.float32),
        grid=(n_pad // TILE_N,),
        in_specs=[
            pl.BlockSpec((1, TILE_N), lambda i: (0, i)),       # t tile
            pl.BlockSpec((H, 1), const2),                       # w0 (resident)
            pl.BlockSpec((H, 1), const2),                       # b0
            pl.BlockSpec((N_LAYERS, H, H), const3),              # wh
            pl.BlockSpec((N_LAYERS, H, 1), const3),              # bh
            pl.BlockSpec((OUT_SUB, H), const2),                  # wo (padded)
            pl.BlockSpec((OUT_SUB, 1), const2),                  # bo (padded)
        ],
        out_specs=pl.BlockSpec((OUT_SUB, TILE_N), lambda i: (0, i)),
        compiler_params=pltpu.CompilerParams(
            dimension_semantics=("parallel",)),
    )(
        t_t,
        params["w0"], params["b0"],
        params["wh"], params["bh"],
        params["wo_pad"], params["bo_pad"],
    )
    # Back to (N, 3): drop pad rows/cols, points back on rows.
    return out_t[:OUT_DIM, :n].T


def init_params(key):
    """Deterministic init mimicking torch.nn.Linear default (U[-1/sqrt(in), 1/sqrt(in)]).

    Weights are stored in torch (out_features, in_features) layout; the kernel
    computes W @ h with points on the lane axis.
    """
    ks = jax.random.split(key, 8)

    def uni(k, shape, fan_in):
        bound = 1.0 / jnp.sqrt(float(fan_in))
        return jax.random.uniform(k, shape, jnp.float32, -bound, bound)

    w0 = uni(ks[0], (H, 1), 1)
    b0 = uni(ks[1], (H, 1), 1)
    wh = uni(ks[2], (N_LAYERS, H, H), H)
    bh = uni(ks[3], (N_LAYERS, H, 1), H)
    wo = uni(ks[4], (OUT_DIM, H), H)
    bo = uni(ks[5], (OUT_DIM, 1), H)

    # Pad the output layer 3 -> 8 sublanes with zeros (exact semantics preserved).
    wo_pad = jnp.zeros((OUT_SUB, H), jnp.float32).at[:OUT_DIM, :].set(wo)
    bo_pad = jnp.zeros((OUT_SUB, 1), jnp.float32).at[:OUT_DIM, :].set(bo)

    # ODE parameters of the module (log_* nn.Parameters); not used by forward()
    # but initialized deterministically for completeness.
    eq = {
        "log_Ng_params": jax.random.normal(ks[6], (2,)) * 0.01,
        "log_Tg_params": jax.random.normal(ks[7], (2,)) * 0.01,
    }

    return {
        "w0": w0, "b0": b0,
        "wh": wh, "bh": bh,
        "wo": wo, "bo": bo,
        "wo_pad": wo_pad, "bo_pad": bo_pad,
        "eq": eq,
    }


def _reference_forward(t, params):
    """Pure-JAX reference of the same MLP (points-on-rows, exact sigmoid SiLU)."""
    h = t @ params["w0"].T + params["b0"].T               # (N, H)
    h = h * jax.nn.sigmoid(h)
    for l in range(N_LAYERS):
        h = h @ params["wh"][l].T + params["bh"][l].T
        h = h * jax.nn.sigmoid(h)
    return h @ params["wo"].T + params["bo"].T            # (N, 3)


if __name__ == "__main__":
    key = jax.random.PRNGKey(0)
    pkey, tkey = jax.random.split(key)

    params = init_params(pkey)

    # Small batch of time points, shape (N, 1) — consistent with data_train['t']
    # / physics_train_domain being a column of scalars.  700 is deliberately not
    # a multiple of TILE_N to exercise the tail-padding path (grid of 2 steps).
    N_POINTS = 700
    t = jax.random.uniform(tkey, (N_POINTS, 1), jnp.float32, 0.0, 1.0)

    out = jax.block_until_ready(pinn_ode_forward(t, params))
    ref = _reference_forward(t, params)

    assert out.shape == (N_POINTS, OUT_DIM)
    # tanh-form SiLU vs. exp-form sigmoid differ only at ~1e-6; tolerance has slack.
    assert jnp.allclose(out, ref, atol=1e-4, rtol=1e-4), float(
        jnp.max(jnp.abs(out - ref)))

    # TODO(synk): training loop / loss terms (physics_loss, data_loss, Adam,
    # LR scheduling, early stopping) are host-side optimization logic, not part
    # of forward(); omitted.
    print("KERNEL_OK")
</pallas_src>

<mosaic_0001>
module attributes {stable_mosaic.version = 11 : i64} {
  func.func @_mlp_kernel(%arg0: i32, %arg1: memref<1x512xf32, #tpu.memory_space<vmem>>, %arg2: memref<32x1xf32, #tpu.memory_space<vmem>>, %arg3: memref<32x1xf32, #tpu.memory_space<vmem>>, %arg4: memref<2x32x32xf32, #tpu.memory_space<vmem>>, %arg5: memref<2x32x1xf32, #tpu.memory_space<vmem>>, %arg6: memref<8x32xf32, #tpu.memory_space<vmem>>, %arg7: memref<8x1xf32, #tpu.memory_space<vmem>>, %arg8: memref<8x512xf32, #tpu.memory_space<vmem>>) attributes {dimension_semantics = [#tpu.dimension_semantics<parallel>], iteration_bounds = array<i64: 2>, scalar_prefetch = 0 : i64, scratch_operands = 0 : i64, tpu.core_type = #tpu.core_type<tc>, window_params = [{transform_indices = @transform_0, window_bounds = array<i64: 1, 512>}, {pipeline_mode = #tpu.pipeline_mode<synchronous>, transform_indices = @transform_1, window_bounds = array<i64: 32, 1>}, {pipeline_mode = #tpu.pipeline_mode<synchronous>, transform_indices = @transform_2, window_bounds = array<i64: 32, 1>}, {pipeline_mode = #tpu.pipeline_mode<synchronous>, transform_indices = @transform_3, window_bounds = array<i64: 2, 32, 32>}, {pipeline_mode = #tpu.pipeline_mode<synchronous>, transform_indices = @transform_4, window_bounds = array<i64: 2, 32, 1>}, {pipeline_mode = #tpu.pipeline_mode<synchronous>, transform_indices = @transform_5, window_bounds = array<i64: 8, 32>}, {pipeline_mode = #tpu.pipeline_mode<synchronous>, transform_indices = @transform_6, window_bounds = array<i64: 8, 1>}, {transform_indices = @transform_7, window_bounds = array<i64: 8, 512>}]} {
    %c0 = arith.constant 0 : index
    %c0_0 = arith.constant 0 : index
    %0 = vector.load %arg1[%c0, %c0_0] : memref<1x512xf32, #tpu.memory_space<vmem>>, vector<1x512xf32>
    %c0_1 = arith.constant 0 : index
    %c0_2 = arith.constant 0 : index
    %1 = vector.load %arg2[%c0_1, %c0_2] : memref<32x1xf32, #tpu.memory_space<vmem>>, vector<32x1xf32>
    %2 = vector.broadcast %1 : vector<32x1xf32> to vector<32x512xf32>
    %3 = vector.broadcast %0 : vector<1x512xf32> to vector<32x512xf32>
    %4 = arith.mulf %2, %3 : vector<32x512xf32>
    %c0_3 = arith.constant 0 : index
    %c0_4 = arith.constant 0 : index
    %5 = vector.load %arg3[%c0_3, %c0_4] : memref<32x1xf32, #tpu.memory_space<vmem>>, vector<32x1xf32>
    %6 = vector.broadcast %5 : vector<32x1xf32> to vector<32x512xf32>
    %7 = arith.addf %4, %6 : vector<32x512xf32>
    %cst = arith.constant 5.000000e-01 : f32
    %8 = vector.broadcast %cst : f32 to vector<32x512xf32>
    %9 = arith.mulf %8, %7 : vector<32x512xf32>
    %cst_5 = arith.constant 5.000000e-01 : f32
    %10 = vector.broadcast %cst_5 : f32 to vector<32x512xf32>
    %11 = arith.mulf %10, %7 : vector<32x512xf32>
    %12 = math.tanh %11 : vector<32x512xf32>
    %cst_6 = arith.constant 1.000000e+00 : f32
    %13 = vector.broadcast %cst_6 : f32 to vector<32x512xf32>
    %14 = arith.addf %13, %12 : vector<32x512xf32>
    %15 = arith.mulf %9, %14 : vector<32x512xf32>
    %c0_7 = arith.constant 0 : index
    %c0_8 = arith.constant 0 : index
    %c0_9 = arith.constant 0 : index
    %16 = vector.load %arg4[%c0_7, %c0_8, %c0_9] : memref<2x32x32xf32, #tpu.memory_space<vmem>>, vector<1x32x32xf32>
    %17 = vector.shape_cast %16 : vector<1x32x32xf32> to vector<32x32xf32>
    %cst_10 = arith.constant dense<0.000000e+00> : vector<32x512xf32>
    %18 = tpu.matmul %17, %15, %cst_10 {dimension_numbers = #tpu.dot_dimension_numbers<[1], [0], [0], [1], [0, 0, 1, 1], [], []>} : vector<32x32xf32>, vector<32x512xf32>, vector<32x512xf32> -> vector<32x512xf32>
    %c0_11 = arith.constant 0 : index
    %c0_12 = arith.constant 0 : index
    %c0_13 = arith.constant 0 : index
    %19 = vector.load %arg5[%c0_11, %c0_12, %c0_13] : memref<2x32x1xf32, #tpu.memory_space<vmem>>, vector<1x32x1xf32>
    %20 = vector.shape_cast %19 : vector<1x32x1xf32> to vector<32x1xf32>
    %21 = vector.broadcast %20 : vector<32x1xf32> to vector<32x512xf32>
    %22 = arith.addf %18, %21 : vector<32x512xf32>
    %cst_14 = arith.constant 5.000000e-01 : f32
    %23 = vector.broadcast %cst_14 : f32 to vector<32x512xf32>
    %24 = arith.mulf %23, %22 : vector<32x512xf32>
    %cst_15 = arith.constant 5.000000e-01 : f32
    %25 = vector.broadcast %cst_15 : f32 to vector<32x512xf32>
    %26 = arith.mulf %25, %22 : vector<32x512xf32>
    %27 = math.tanh %26 : vector<32x512xf32>
    %cst_16 = arith.constant 1.000000e+00 : f32
    %28 = vector.broadcast %cst_16 : f32 to vector<32x512xf32>
    %29 = arith.addf %28, %27 : vector<32x512xf32>
    %30 = arith.mulf %24, %29 : vector<32x512xf32>
    %c1 = arith.constant 1 : index
    %c0_17 = arith.constant 0 : index
    %c0_18 = arith.constant 0 : index
    %31 = vector.load %arg4[%c1, %c0_17, %c0_18] : memref<2x32x32xf32, #tpu.memory_space<vmem>>, vector<1x32x32xf32>
    %32 = vector.shape_cast %31 : vector<1x32x32xf32> to vector<32x32xf32>
    %cst_19 = arith.constant dense<0.000000e+00> : vector<32x512xf32>
    %33 = tpu.matmul %32, %30, %cst_19 {dimension_numbers = #tpu.dot_dimension_numbers<[1], [0], [0], [1], [0, 0, 1, 1], [], []>} : vector<32x32xf32>, vector<32x512xf32>, vector<32x512xf32> -> vector<32x512xf32>
    %c1_20 = arith.constant 1 : index
    %c0_21 = arith.constant 0 : index
    %c0_22 = arith.constant 0 : index
    %34 = vector.load %arg5[%c1_20, %c0_21, %c0_22] : memref<2x32x1xf32, #tpu.memory_space<vmem>>, vector<1x32x1xf32>
    %35 = vector.shape_cast %34 : vector<1x32x1xf32> to vector<32x1xf32>
    %36 = vector.broadcast %35 : vector<32x1xf32> to vector<32x512xf32>
    %37 = arith.addf %33, %36 : vector<32x512xf32>
    %cst_23 = arith.constant 5.000000e-01 : f32
    %38 = vector.broadcast %cst_23 : f32 to vector<32x512xf32>
    %39 = arith.mulf %38, %37 : vector<32x512xf32>
    %cst_24 = arith.constant 5.000000e-01 : f32
    %40 = vector.broadcast %cst_24 : f32 to vector<32x512xf32>
    %41 = arith.mulf %40, %37 : vector<32x512xf32>
    %42 = math.tanh %41 : vector<32x512xf32>
    %cst_25 = arith.constant 1.000000e+00 : f32
    %43 = vector.broadcast %cst_25 : f32 to vector<32x512xf32>
    %44 = arith.addf %43, %42 : vector<32x512xf32>
    %45 = arith.mulf %39, %44 : vector<32x512xf32>
    %c0_26 = arith.constant 0 : index
    %c0_27 = arith.constant 0 : index
    %46 = vector.load %arg6[%c0_26, %c0_27] : memref<8x32xf32, #tpu.memory_space<vmem>>, vector<8x32xf32>
    %cst_28 = arith.constant dense<0.000000e+00> : vector<8x512xf32>
    %47 = tpu.matmul %46, %45, %cst_28 {dimension_numbers = #tpu.dot_dimension_numbers<[1], [0], [0], [1], [0, 0, 1, 1], [], []>} : vector<8x32xf32>, vector<32x512xf32>, vector<8x512xf32> -> vector<8x512xf32>
    %c0_29 = arith.constant 0 : index
    %c0_30 = arith.constant 0 : index
    %48 = vector.load %arg7[%c0_29, %c0_30] : memref<8x1xf32, #tpu.memory_space<vmem>>, vector<8x1xf32>
    %49 = vector.broadcast %48 : vector<8x1xf32> to vector<8x512xf32>
    %50 = arith.addf %47, %49 : vector<8x512xf32>
    %c0_31 = arith.constant 0 : index
    %c0_32 = arith.constant 0 : index
    %51 = vector.load %arg8[%c0_31, %c0_32] : memref<8x512xf32, #tpu.memory_space<vmem>>, vector<8x512xf32>
    tpu.vector_store %arg8[%c0_31, %c0_32], %50 {strides = array<i32>} : memref<8x512xf32, #tpu.memory_space<vmem>>, vector<8x512xf32>,
    return
  }
  func.func @transform_0(%arg0: i32) -> (i32, i32) {
    %c0_i32 = arith.constant 0 : i32
    %c0_i32_0 = arith.constant 0 : i32
    return %c0_i32, %arg0 : i32, i32
  }
  func.func @transform_1(%arg0: i32) -> (i32, i32) {
    %c0_i32 = arith.constant 0 : i32
    %c0_i32_0 = arith.constant 0 : i32
    %c0_i32_1 = arith.constant 0 : i32
    return %c0_i32, %c0_i32_0 : i32, i32
  }
  func.func @transform_2(%arg0: i32) -> (i32, i32) {
    %c0_i32 = arith.constant 0 : i32
    %c0_i32_0 = arith.constant 0 : i32
    %c0_i32_1 = arith.constant 0 : i32
    return %c0_i32, %c0_i32_0 : i32, i32
  }
  func.func @transform_3(%arg0: i32) -> (i32, i32, i32) {
    %c0_i32 = arith.constant 0 : i32
    %c0_i32_0 = arith.constant 0 : i32
    %c0_i32_1 = arith.constant 0 : i32
    %c0_i32_2 = arith.constant 0 : i32
    return %c0_i32, %c0_i32_0, %c0_i32_1 : i32, i32, i32
  }
  func.func @transform_4(%arg0: i32) -> (i32, i32, i32) {
    %c0_i32 = arith.constant 0 : i32
    %c0_i32_0 = arith.constant 0 : i32
    %c0_i32_1 = arith.constant 0 : i32
    %c0_i32_2 = arith.constant 0 : i32
    return %c0_i32, %c0_i32_0, %c0_i32_1 : i32, i32, i32
  }
  func.func @transform_5(%arg0: i32) -> (i32, i32) {
    %c0_i32 = arith.constant 0 : i32
    %c0_i32_0 = arith.constant 0 : i32
    %c0_i32_1 = arith.constant 0 : i32
    return %c0_i32, %c0_i32_0 : i32, i32
  }
  func.func @transform_6(%arg0: i32) -> (i32, i32) {
    %c0_i32 = arith.constant 0 : i32
    %c0_i32_0 = arith.constant 0 : i32
    %c0_i32_1 = arith.constant 0 : i32
    return %c0_i32, %c0_i32_0 : i32, i32
  }
  func.func @transform_7(%arg0: i32) -> (i32, i32) {
    %c0_i32 = arith.constant 0 : i32
    %c0_i32_0 = arith.constant 0 : i32
    return %c0_i32, %arg0 : i32, i32
  }
}

</mosaic_0001>

<bundles_post_ra>
// kernel: pinn_ode_forward.1
= control target key start
LH: loop header
LB: loop body
LE: loop exit
PB: predicated region body
PF: predicated region fallthrough
CT: control target
= control target key end

     0   :  { %s1463_s24 = smov 0   ;;  %s1700_s0 = inlined_call_operand.vmem [shape: f32[1,1024], index: 0, kind: input, shape index: {}]   ;;  %s1701_s1 = inlined_call_operand.vmem [shape: f32[32,1], index: 1, kind: input, shape index: {}]   ;;  %s1702_s2 = inlined_call_operand.vmem [shape: f32[32,1], index: 2, kind: input, shape index: {}]   ;;  %s1703_s3 = inlined_call_operand.vmem [shape: f32[2,32,32], index: 3, kind: input, shape index: {}]   ;;  %s1704_s4 = inlined_call_operand.vmem [shape: f32[2,32,1], index: 4, kind: input, shape index: {}]   ;;  %s1705_s5 = inlined_call_operand.vmem [shape: f32[8,32], index: 5, kind: input, shape index: {}]   ;;  %s1706_s6 = inlined_call_operand.vmem [shape: f32[8,1], index: 6, kind: input, shape index: {}]   ;;  %s1707_s7 = inlined_call_operand.vmem [shape: f32[8,1024], index: 7, kind: output, shape index: {}]  }
   0x1 LB: > { %s1221_s25 = sadd.s32 4294967295, %s1419_s24   ;;  %p1225_p0 = scmp.ge.s32.totalorder %s1419_s24, 1  ;;  %s1419_s24 = sphi %s1463_s24, %s17_s24  }
   0x2   : > { %p237_p1 = scmp.lt.s32.totalorder %s1419_s24, 3 }
   0x4   : > { %p238_p2 = pnand %p1225_p0, %p237_p1 }
   0x5   : > { %v341_v0 = vld [vmem:[%s1702_s2] sm:$0xff] (!%p238_p2)  ;;  %v1421_v2 = vmov (!%p238_p2), 0   ;;  %v342_v3 = vld [vmem:[%s1702_s2 + $0x8] sm:$0xff] (!%p238_p2)  ;;  %v283_v5 = vld [vmem:[%s1701_s1 + $0x18] sm:$0xff] (!%p238_p2)  ;;  %v1422_v18 = vmov (!%p238_p2), 0.0   ;;  %s1226_s16 = sshll.u32 (!%p238_p2), %s1221_s25, 2  ;;  %v305_v19 = vlaneseq (!%p238_p2) }
   0x6   : > { %241 = sbr.rel (%p238_p2) target bundleno = 903 (0x387), region = 48  ;;  %v280_v1 = vld [vmem:[%s1701_s1] sm:$0xff] (!%p238_p2)  ;;  %1316 = vset.pattern.permute.xlu1 (!%p238_p2), %v1421_v2  ;;  %1315 = vset.pattern.permute.xlu0 (!%p238_p2), %v1421_v2  ;;  %v281_v4 = vld [vmem:[%s1701_s1 + $0x8] sm:$0xff] (!%p238_p2)  ;;  %v282_v6 = vld [vmem:[%s1701_s1 + $0x10] sm:$0xff] (!%p238_p2)  ;;  %p269_p3 = scmp.lt.s32.totalorder (!%p238_p2), %s1226_s16, 7  ;;  %vm473_vm0 = vcmask (!%p238_p2), 261120  }
   0x7   : > { %347 = vperm.xlu1 (!%p238_p2), %1316, %v341_v0   ;;  %286 = vperm.xlu0 (!%p238_p2), %1315, %v280_v1   ;;  %v344_v7 = vld [vmem:[%s1702_s2 + $0x18] sm:$0xff] (!%p238_p2)  ;;  %v343_v8 = vld [vmem:[%s1702_s2 + $0x10] sm:$0xff] (!%p238_p2)  ;;  %v450_v9 = vld [vmem:[%s1704_s4 + $0x8] sm:$0xff] (!%p238_p2)  ;;  %v306_v20 = vshrl.u32 (!%p238_p2), %v305_v19, 7 }
   0x8   : > { %v449_v10 = vld [vmem:[%s1704_s4] sm:$0xff] (!%p238_p2)  ;;  %v452_v11 = vld [vmem:[%s1704_s4 + $0x18] sm:$0xff] (!%p238_p2)  ;;  %v451_v12 = vld [vmem:[%s1704_s4 + $0x10] sm:$0xff] (!%p238_p2)  ;;  %550 = vmatprep.mubr.f32.mxu0 (!%p238_p2), %v1422_v18  ;;  %639 = vmatprep.mubr.f32.mxu1 (!%p238_p2), %v1422_v18 }
   0x9   : > { %v1242_v13 = vld [vmem:[%s1704_s4 + $0x28] sm:$0xff] (!%p238_p2)  ;;  %v1241_v14 = vld [vmem:[%s1704_s4 + $0x20] sm:$0xff] (!%p238_p2)  ;;  %v1244_v15 = vld [vmem:[%s1704_s4 + $0x38] sm:$0xff] (!%p238_p2)  ;;  %v311_v21 = vsub.s32 (!%p238_p2), 1, %v306_v20  ;;  %v307_v22 = vsub.s32 (!%p238_p2), 0, %v306_v20  ;;  %v319_v23 = vsub.s32 (!%p238_p2), 3, %v306_v20 }
   0xa   : > { %v1243_v16 = vld [vmem:[%s1704_s4 + $0x30] sm:$0xff] (!%p238_p2)  ;;  %v1013_v17 = vld [vmem:[%s1706_s6] sm:$0xff] (!%p238_p2)  ;;  %v315_v36 = vsub.s32 (!%p238_p2), 2, %v306_v20 }
   0xb   : > { %352 = vperm.xlu1 (!%p238_p2), %1316, %v342_v3   ;;  %291 = vperm.xlu0 (!%p238_p2), %1315, %v281_v4  }
   0xd   : > { %s1709_s16 = smov (!%p269_p3, %s1226_s16), 7 }
   0xe   : > { %s271_s19 = scalar_lea.vmem %s1700_s0, %s1709_s16  ;;  %s1228_s17 = sshll.u32 %s1709_s16, 3 }
   0xf   : > { %301 = vperm.xlu1 %1316, %v283_v5   ;;  %296 = vperm.xlu0 %1315, %v282_v6   ;;  %v279_v24 = vld [vmem:[%s271_s19] sm:$0xf]  ;;  %s277_s25 = scalar_lea.vmem %s1707_s7, %s1228_s17 }
  0x10   : > { %v312_v25 = vrot.slane %v279_v24, %v311_v21  ;;  %v308_v26 = vrot.slane %v279_v24, %v307_v22  ;;  %v320_v27 = vrot.slane %v279_v24, %v319_v23  ;;  %v316_v42 = vrot.slane %v279_v24, %v315_v36 }
  0x13   : > { %362 = vperm.xlu1 %1316, %v344_v7   ;;  %357 = vperm.xlu0 %1315, %v343_v8  }
  0x17   : > { %460 = vperm.xlu1 %1316, %v450_v9   ;;  %455 = vperm.xlu0 %1315, %v449_v10  }
  0x1b   : > { %470 = vperm.xlu1 %1316, %v452_v11   ;;  %465 = vperm.xlu0 %1315, %v451_v12  }
  0x1f   : > { %745 = vperm.xlu1 %1316, %v1242_v13   ;;  %740 = vperm.xlu0 %1315, %v1241_v14  }
  0x23   : > { %755 = vperm.xlu1 %1316, %v1244_v15   ;;  %750 = vperm.xlu0 %1315, %v1243_v16  }
  0x27   : > { %1016 = vperm.xlu0 %1315, %v1013_v17  }
  0x86   : > { %v348_v28 = vpop.permute.xlu1 %347  ;;  %v287_v29 = vpop.permute.xlu0 %286 }
  0x87   : > { %v326_v30 = vmul.f32 %v312_v25, %v287_v29  ;;  %v325_v31 = vmul.f32 %v308_v26, %v287_v29  ;;  %v328_v32 = vmul.f32 %v320_v27, %v287_v29  ;;  %v327_v4 = vmul.f32 %v316_v42, %v287_v29 }
  0x89   : > { %v366_v35 = vadd.f32 %v348_v28, %v326_v30  ;;  %v368_v37 = vadd.f32 %v348_v28, %v328_v32  ;;  %v365_v38 = vadd.f32 %v348_v28, %v325_v31  ;;  %v367_v15 = vadd.f32 %v348_v28, %v327_v4 }
  0x8a   : > { %v353_v33 = vpop.permute.xlu1 %352  ;;  %v292_v34 = vpop.permute.xlu0 %291 }
  0x8b   : > { %v1532_v41 = vmul.f32 0.5, %v366_v35  ;;  %v329_v43 = vmul.f32 %v308_v26, %v292_v34  ;;  %v330_v44 = vmul.f32 %v312_v25, %v292_v34  ;;  %v332_v45 = vmul.f32 %v320_v27, %v292_v34 }
  0x8c   : > { %v1534_v46 = vmul.f32 0.5, %v368_v37  ;;  %v1536_v47 = vmul.f32 0.5, %v365_v38  ;;  %v331_v7 = vmul.f32 %v316_v42, %v292_v34  ;;  %v383_v23 = vmul.f32 0.5, %v367_v15 }
  0x8d   : > { %1317 = vtanh.f32 %v1532_v41  ;;  %v370_v9 = vadd.f32 %v353_v33, %v330_v44  ;;  %v372_v11 = vadd.f32 %v353_v33, %v332_v45  ;;  %v369_v13 = vadd.f32 %v353_v33, %v329_v43 }
  0x8e   : > { %v302_v39 = vpop.permute.xlu1 %301  ;;  %v297_v40 = vpop.permute.xlu0 %296  ;;  %1319 = vtanh.f32 %v1534_v46  ;;  %v371_v17 = vadd.f32 %v353_v33, %v331_v7 }
  0x8f   : > { %v337_v48 = vmul.f32 %v308_v26, %v302_v39  ;;  %v338_v49 = vmul.f32 %v312_v25, %v302_v39  ;;  %v339_v50 = vmul.f32 %v316_v42, %v302_v39  ;;  %v340_v51 = vmul.f32 %v320_v27, %v302_v39 }
  0x90   : > { %v333_v52 = vmul.f32 %v308_v26, %v297_v40  ;;  %v334_v53 = vmul.f32 %v312_v25, %v297_v40  ;;  %v335_v54 = vmul.f32 %v316_v42, %v297_v40  ;;  %v336_v61 = vmul.f32 %v320_v27, %v297_v40 }
  0x91   : > { %1321 = vtanh.f32 %v1536_v47  ;;  %v386_v16 = vmul.f32 0.5, %v370_v9  ;;  %v388_v20 = vmul.f32 0.5, %v372_v11  ;;  %v385_v21 = vmul.f32 0.5, %v369_v13 }
  0x92   : > { %v363_v55 = vpop.permute.xlu1 %362  ;;  %v358_v56 = vpop.permute.xlu0 %357  ;;  %v387_v24 = vmul.f32 0.5, %v371_v17 }
  0x93   : > { %v377_v57 = vadd.f32 %v363_v55, %v337_v48  ;;  %v378_v58 = vadd.f32 %v363_v55, %v338_v49  ;;  %v379_v59 = vadd.f32 %v363_v55, %v339_v50  ;;  %v380_v60 = vadd.f32 %v363_v55, %v340_v51 }
  0x94   : > { %v373_v62 = vadd.f32 %v358_v56, %v333_v52  ;;  %v374_v63 = vadd.f32 %v358_v56, %v334_v53  ;;  %v375_v3 = vadd.f32 %v358_v56, %v335_v54  ;;  %v376_v6 = vadd.f32 %v358_v56, %v336_v61 }
  0x95   : > { %v1540_v0 = vmul.f32 0.5, %v377_v57  ;;  %v1542_v1 = vmul.f32 0.5, %v378_v58  ;;  %v1544_v2 = vmul.f32 0.5, %v379_v59  ;;  %v1546_v5 = vmul.f32 0.5, %v380_v60 }
  0x96   : > { %v1550_v8 = vmul.f32 0.5, %v373_v62  ;;  %v390_v10 = vmul.f32 0.5, %v374_v63  ;;  %v1554_v12 = vmul.f32 0.5, %v375_v3  ;;  %v392_v14 = vmul.f32 0.5, %v376_v6 }
  0x97   : > { %1323 = vtanh.f32 %v1540_v0  ;;  %v1318_v19 = vpop.eup %1317 }
  0x98   : > { %1325 = vtanh.f32 %v1542_v1  ;;  %v1320_v22 = vpop.eup %1319  ;;  %v414_v31 = vadd.f32 1.0, %v1318_v19  ;;  %v448_v19 = vld [vmem:[%s1703_s3 + $0x18] sm:$0xff] }
  0x99   : > { %1327 = vtanh.f32 %v1544_v2  ;;  %v416_v33 = vadd.f32 1.0, %v1320_v22 }
  0x9a   : > { %1329 = vtanh.f32 %v1546_v5  ;;  %v430_v42 = vmul.f32 %v414_v31, %v1532_v41 }
  0x9b   : > { %1331 = vtanh.f32 %v1550_v8  ;;  %v1322_v25 = vpop.eup %1321  ;;  %v432_v49 = vmul.f32 %v416_v33, %v1534_v46 }
  0x9c   : > { %1333 = vtanh.f32 %v390_v10  ;;  %v413_v34 = vadd.f32 1.0, %v1322_v25 }
  0x9d   : > { %1335 = vtanh.f32 %v1554_v12 }
  0x9e   : > { %1337 = vtanh.f32 %v392_v14  ;;  %v429_v50 = vmul.f32 %v413_v34, %v1536_v47 }
  0x9f   : > { %1339 = vtanh.f32 %v386_v16 }
  0xa0   : > { %1341 = vtanh.f32 %v388_v20 }
  0xa1   : > { %v1324_v26 = vpop.eup %1323  ;;  %1343 = vtanh.f32 %v385_v21 }
  0xa2   : > { %v1326_v27 = vpop.eup %1325  ;;  %1345 = vtanh.f32 %v383_v23  ;;  %v425_v39 = vadd.f32 1.0, %v1324_v26 }
  0xa3   : > { %v1328_v28 = vpop.eup %1327  ;;  %1347 = vtanh.f32 %v387_v24  ;;  %v426_v37 = vadd.f32 1.0, %v1326_v27 }
  0xa4   : > { %v1330_v29 = vpop.eup %1329  ;;  %v427_v56 = vadd.f32 1.0, %v1328_v28  ;;  %v441_v41 = vmul.f32 %v425_v39, %v1540_v0 }
  0xa5   : > { %v1332_v30 = vpop.eup %1331  ;;  %v428_v44 = vadd.f32 1.0, %v1330_v29  ;;  %v442_v55 = vmul.f32 %v426_v37, %v1542_v1  ;;  %v461_v29 = vpop.permute.xlu1 %460 }
  0xa6   : > { %v1334_v32 = vpop.eup %1333  ;;  %v421_v51 = vadd.f32 1.0, %v1332_v30 }
  0xa7   : > { %v1336_v35 = vpop.eup %1335  ;;  %v422_v36 = vadd.f32 1.0, %v1334_v32  ;;  %v444_v46 = vmul.f32 %v428_v44, %v1546_v5 }
  0xa8   : > { %v1338_v38 = vpop.eup %1337  ;;  %v423_v60 = vadd.f32 1.0, %v1336_v35  ;;  %v437_v7 = vmul.f32 %v421_v51, %v1550_v8  ;;  %v446_v8 = vld [vmem:[%s1703_s3 + $0x8] sm:$0xff] }
  0xa9   : > { %v1340_v40 = vpop.eup %1339  ;;  %v424_v43 = vadd.f32 1.0, %v1338_v38  ;;  %v438_v54 = vmul.f32 %v422_v36, %v390_v10  ;;  %v443_v10 = vmul.f32 %v427_v56, %v1544_v2  ;;  %v445_v2 = vld [vmem:[%s1703_s3] sm:$0xff] }
  0xaa   : > { %v1342_v45 = vpop.eup %1341  ;;  %v418_v48 = vadd.f32 1.0, %v1340_v40  ;;  %v439_v15 = vmul.f32 %v423_v60, %v1554_v12  ;;  %v1263_v5 = vpack.c.bf16 %v441_v41, %v437_v7  ;;  %v447_v12 = vld [vmem:[%s1703_s3 + $0x10] sm:$0xff] }
  0xab   : > { %v1344_v52 = vpop.eup %1343  ;;  %v420_v53 = vadd.f32 1.0, %v1342_v45  ;;  %v440_v3 = vmul.f32 %v424_v43, %v392_v14  ;;  %v1261_v1 = vpack.c.bf16 %v442_v55, %v438_v54 }
  0xac   : > { %v1346_v57 = vpop.eup %1345  ;;  %v434_v58 = vmul.f32 %v418_v48, %v386_v16  ;;  %v417_v59 = vadd.f32 1.0, %v1344_v52  ;;  %v1271_v17 = vpack.c.bf16 %v443_v10, %v439_v15 }
  0xad   : > { %v1348_v61 = vpop.eup %1347  ;;  %v436_v62 = vmul.f32 %v420_v53, %v388_v20  ;;  %v415_v63 = vadd.f32 1.0, %v1346_v57  ;;  %v1269_v16 = vpack.c.bf16 %v444_v46, %v440_v3  ;;  %v456_v20 = vpop.permute.xlu0 %455 }
  0xae   : > { %v1257_v47 = vpack.c.bf16 %v434_v58, %v430_v42  ;;  %v433_v4 = vmul.f32 %v417_v59, %v385_v21  ;;  %v419_v6 = vadd.f32 1.0, %v1348_v61  ;;  %v471_v58 = vpop.permute.xlu1 %470 }
  0xaf   : > { %v1265_v9 = vpack.c.bf16 %v436_v62, %v432_v49  ;;  %v431_v13 = vmul.f32 %v415_v63, %v383_v23 }
  0xb0   : > { %1258 = vmatprep.subr.bf16.mxu0 %v1257_v47  ;;  %v1259_v11 = vpack.c.bf16 %v433_v4, %v429_v50  ;;  %v435_v0 = vmul.f32 %v419_v6, %v387_v24 }
  0xb1   : > { %1266 = vmatprep.subr.bf16.mxu1 %v1265_v9  ;;  %v466_v43 = vpop.permute.xlu0 %465 }
  0xb2   : > { %1260 = vmatpush1.bf16.msra.mxu0 %v1259_v11  ;;  %v1267_v14 = vpack.c.bf16 %v435_v0, %v431_v13 }
  0xb3   : > { %1262 = vmatprep.subr.bf16.mxu0 %v1261_v1 }
  0xb4   : > { %1268 = vmatpush1.bf16.msra.mxu1 %v1267_v14 }
  0xb5   : > { %1270 = vmatprep.subr.bf16.mxu1 %v1269_v16 }
  0xb6   : > { %1264 = vmatpush1.bf16.msra.mxu0 %v1263_v5 }
  0xb8   : > { %1272 = vmatpush1.bf16.msra.mxu1 %v1271_v17 }
  0xb9   : > { %1229 = vmatmul.mubr.msk.f32.vlgmr.msra.gmra.mrb[0].mxu0 %vm473_vm0, %v445_v2 }
  0xba   : > { %556 = vmatprep.mubr.f32.mxu0 %v1422_v18 }
  0xbb   : > { %1233 = vmatmul.mubr.msk.f32.vlgmr.msra.gmra.mrb[0].mxu1 %vm473_vm0, %v445_v2 }
  0xbc   : > { %645 = vmatprep.mubr.f32.mxu1 %v1422_v18 }
  0xbd   : > { %1230 = vmatmul.mubr.msk.f32.gmra.mrb[2].mxu0 %vm473_vm0, %v446_v8 }
  0xbe   : > { %562 = vmatprep.mubr.f32.mxu0 %v1422_v18 }
  0xbf   : > { %1234 = vmatmul.mubr.msk.f32.gmra.mrb[2].mxu1 %vm473_vm0, %v446_v8 }
  0xc0   : > { %651 = vmatprep.mubr.f32.mxu1 %v1422_v18 }
  0xc1   : > { %1231 = vmatmul.mubr.msk.f32.gmra.mrb[4].mxu0 %vm473_vm0, %v447_v12 }
  0xc2   : > { %568 = vmatprep.mubr.f32.mxu0 %v1422_v18 }
  0xc3   : > { %1235 = vmatmul.mubr.msk.f32.gmra.mrb[4].mxu1 %vm473_vm0, %v447_v12 }
  0xc4   : > { %657 = vmatprep.mubr.f32.mxu1 %v1422_v18 }
  0xc5   : > { %1232 = vmatmul.mubr.msk.f32.gmra.mrb[6].mxu0 %vm473_vm0, %v448_v19 }
  0xc6   : > { %834 = vmatprep.mubr.f32.mxu0 %v1422_v18 }
  0xc7   : > { %1236 = vmatmul.mubr.msk.f32.gmra.mrb[6].mxu1 %vm473_vm0, %v448_v19 }
  0xc8   : > { %923 = vmatprep.mubr.f32.mxu1 %v1422_v18 }
 0x18c   : > { %v552_v21 = vpop.f32.mrb[0].mxu0 }
 0x18d   : > { %v553_v22 = vadd.f32 %v552_v21, %v456_v20  ;;  %v554_v23 = vpop.f32.mrb[1].mxu0 }
 0x18e   : > { %v641_v24 = vpop.f32.mrb[0].mxu1  ;;  %v555_v25 = vadd.f32 %v554_v23, %v456_v20 }
 0x18f   : > { %v1596_v26 = vmul.f32 0.5, %v553_v22  ;;  %v642_v27 = vadd.f32 %v641_v24, %v456_v20  ;;  %v643_v28 = vpop.f32.mrb[1].mxu1 }
 0x190   : > { %v1598_v30 = vmul.f32 0.5, %v555_v25  ;;  %v644_v31 = vadd.f32 %v643_v28, %v456_v20  ;;  %v558_v32 = vpop.f32.mrb[2].mxu0 }
 0x191   : > { %1349 = vtanh.f32 %v1596_v26  ;;  %v1601_v33 = vmul.f32 0.5, %v642_v27  ;;  %v559_v34 = vadd.f32 %v558_v32, %v461_v29  ;;  %v560_v35 = vpop.f32.mrb[3].mxu0 }
 0x192   : > { %1351 = vtanh.f32 %v1598_v30  ;;  %v1604_v36 = vmul.f32 0.5, %v644_v31  ;;  %v647_v37 = vpop.f32.mrb[2].mxu1  ;;  %v561_v38 = vadd.f32 %v560_v35, %v461_v29 }
 0x193   : > { %1353 = vtanh.f32 %v1601_v33  ;;  %v668_v39 = vmul.f32 0.5, %v559_v34  ;;  %v648_v40 = vadd.f32 %v647_v37, %v461_v29  ;;  %v649_v42 = vpop.f32.mrb[3].mxu1 }
 0x194   : > { %1355 = vtanh.f32 %v1604_v36  ;;  %v669_v44 = vmul.f32 0.5, %v561_v38  ;;  %v650_v45 = vadd.f32 %v649_v42, %v461_v29  ;;  %v564_v48 = vpop.f32.mrb[4].mxu0 }
 0x195   : > { %1357 = vtanh.f32 %v668_v39  ;;  %v670_v49 = vmul.f32 0.5, %v648_v40  ;;  %v565_v50 = vadd.f32 %v564_v48, %v466_v43  ;;  %v566_v51 = vpop.f32.mrb[5].mxu0 }
 0x196   : > { %1359 = vtanh.f32 %v669_v44  ;;  %v671_v52 = vmul.f32 0.5, %v650_v45  ;;  %v653_v53 = vpop.f32.mrb[4].mxu1  ;;  %v567_v54 = vadd.f32 %v566_v51, %v466_v43 }
 0x197   : > { %1361 = vtanh.f32 %v670_v49  ;;  %v1608_v55 = vmul.f32 0.5, %v565_v50  ;;  %v654_v56 = vadd.f32 %v653_v53, %v466_v43  ;;  %v655_v57 = vpop.f32.mrb[5].mxu1 }
 0x198   : > { %1363 = vtanh.f32 %v671_v52  ;;  %v1610_v59 = vmul.f32 0.5, %v567_v54  ;;  %v656_v41 = vadd.f32 %v655_v57, %v466_v43  ;;  %v570_v60 = vpop.f32.mrb[6].mxu0 }
 0x199   : > { %1365 = vtanh.f32 %v1608_v55  ;;  %v1613_v61 = vmul.f32 0.5, %v654_v56  ;;  %v571_v62 = vadd.f32 %v570_v60, %v471_v58  ;;  %v572_v63 = vpop.f32.mrb[7].mxu0 }
 0x19a   : > { %1367 = vtanh.f32 %v1610_v59  ;;  %v1616_v3 = vmul.f32 0.5, %v656_v41  ;;  %v659_v46 = vpop.f32.mrb[6].mxu1  ;;  %v573_v47 = vadd.f32 %v572_v63, %v471_v58 }
 0x19b   : > { %v1350_v4 = vpop.eup %1349  ;;  %1369 = vtanh.f32 %v1613_v61  ;;  %v676_v6 = vmul.f32 0.5, %v571_v62  ;;  %v660_v7 = vadd.f32 %v659_v46, %v471_v58  ;;  %v661_v9 = vpop.f32.mrb[7].mxu1 }
 0x19c   : > { %v1352_v1 = vpop.eup %1351  ;;  %1371 = vtanh.f32 %v1616_v3  ;;  %v677_v10 = vmul.f32 0.5, %v573_v47  ;;  %v662_v11 = vadd.f32 %v661_v9, %v471_v58  ;;  %v696_v16 = vadd.f32 1.0, %v1350_v4 }
 0x19d   : > { %v1354_v13 = vpop.eup %1353  ;;  %1373 = vtanh.f32 %v676_v6  ;;  %v678_v0 = vmul.f32 0.5, %v660_v7  ;;  %v697_v17 = vadd.f32 1.0, %v1352_v1 }
 0x19e   : > { %v1356_v15 = vpop.eup %1355  ;;  %1375 = vtanh.f32 %v677_v10  ;;  %v679_v14 = vmul.f32 0.5, %v662_v11  ;;  %v698_v8 = vadd.f32 1.0, %v1354_v13  ;;  %v712_v23 = vmul.f32 %v696_v16, %v1596_v26 }
 0x19f   : > { %v1358_v5 = vpop.eup %1357  ;;  %1377 = vtanh.f32 %v678_v0  ;;  %v699_v20 = vadd.f32 1.0, %v1356_v15  ;;  %v713_v28 = vmul.f32 %v697_v17, %v1598_v30  ;;  %v746_v17 = vpop.permute.xlu1 %745 }
 0x1a0   : > { %v1360_v2 = vpop.eup %1359  ;;  %v700_v12 = vadd.f32 1.0, %v1358_v5  ;;  %1379 = vtanh.f32 %v679_v14  ;;  %v714_v34 = vmul.f32 %v698_v8, %v1601_v33 }
 0x1a1   : > { %v1362_v19 = vpop.eup %1361  ;;  %v701_v21 = vadd.f32 1.0, %v1360_v2  ;;  %v715_v40 = vmul.f32 %v699_v20, %v1604_v36 }
 0x1a2   : > { %v1364_v22 = vpop.eup %1363  ;;  %v716_v24 = vmul.f32 %v700_v12, %v668_v39  ;;  %v702_v25 = vadd.f32 1.0, %v1362_v19 }
 0x1a3   : > { %v1366_v27 = vpop.eup %1365  ;;  %v717_v29 = vmul.f32 %v701_v21, %v669_v44  ;;  %v703_v31 = vadd.f32 1.0, %v1364_v22 }
 0x1a4   : > { %v1368_v32 = vpop.eup %1367  ;;  %v1275_v35 = vpack.c.bf16 %v716_v24, %v712_v23  ;;  %v718_v37 = vmul.f32 %v702_v25, %v670_v49  ;;  %v704_v26 = vadd.f32 1.0, %v1366_v27 }
 0x1a5   : > { %v1370_v38 = vpop.eup %1369  ;;  %v719_v42 = vmul.f32 %v703_v31, %v671_v52  ;;  %v1273_v43 = vpack.c.bf16 %v717_v29, %v713_v28  ;;  %v705_v50 = vadd.f32 1.0, %v1368_v32 }
 0x1a6   : > { %v1372_v45 = vpop.eup %1371  ;;  %v1283_v48 = vpack.c.bf16 %v718_v37, %v714_v34  ;;  %v706_v44 = vadd.f32 1.0, %v1370_v38  ;;  %v720_v36 = vmul.f32 %v704_v26, %v1608_v55  ;;  %v1237_v55 = vld [vmem:[%s1703_s3 + $0x20] sm:$0xff]  ;;  %v756_v26 = vpop.permute.xlu1 %755 }
 0x1a7   : > { %v1374_v39 = vpop.eup %1373  ;;  %1274 = vmatprep.subr.bf16.mxu0 %v1273_v43  ;;  %v1281_v51 = vpack.c.bf16 %v719_v42, %v715_v40  ;;  %v707_v33 = vadd.f32 1.0, %v1372_v45  ;;  %v721_v58 = vmul.f32 %v705_v50, %v1610_v59  ;;  %v1238_v59 = vld [vmem:[%s1703_s3 + $0x28] sm:$0xff] }
 0x1a8   : > { %v1376_v30 = vpop.eup %1375  ;;  %v708_v53 = vadd.f32 1.0, %v1374_v39  ;;  %1276 = vmatpush1.bf16.msra.mxu0 %v1275_v35  ;;  %v722_v62 = vmul.f32 %v706_v44, %v1613_v61  ;;  %v1239_v61 = vld [vmem:[%s1703_s3 + $0x30] sm:$0xff] }
 0x1a9   : > { %v1378_v54 = vpop.eup %1377  ;;  %v709_v56 = vadd.f32 1.0, %v1376_v30  ;;  %1282 = vmatprep.subr.bf16.mxu1 %v1281_v51  ;;  %v723_v47 = vmul.f32 %v707_v33, %v1616_v3  ;;  %v1240_v3 = vld [vmem:[%s1703_s3 + $0x38] sm:$0xff] }
 0x1aa   : > { %v1380_v49 = vpop.eup %1379  ;;  %v724_v52 = vmul.f32 %v708_v53, %v676_v6  ;;  %v710_v57 = vadd.f32 1.0, %v1378_v54  ;;  %1284 = vmatpush1.bf16.msra.mxu1 %v1283_v48  ;;  %v741_v6 = vpop.permute.xlu0 %740 }
 0x1ab   : > { %v725_v41 = vmul.f32 %v709_v56, %v677_v10  ;;  %v711_v60 = vadd.f32 1.0, %v1380_v49 }
 0x1ac   : > { %v1279_v63 = vpack.c.bf16 %v724_v52, %v720_v36  ;;  %v726_v46 = vmul.f32 %v710_v57, %v678_v0 }
 0x1ad   : > { %v727_v4 = vmul.f32 %v711_v60, %v679_v14  ;;  %v1277_v7 = vpack.c.bf16 %v725_v41, %v721_v58 }
 0x1ae   : > { %v1287_v9 = vpack.c.bf16 %v726_v46, %v722_v62  ;;  %v751_v28 = vpop.permute.xlu0 %750 }
 0x1af   : > { %1278 = vmatprep.subr.bf16.mxu0 %v1277_v7  ;;  %v1285_v1 = vpack.c.bf16 %v727_v4, %v723_v47 }
 0x1b0   : > { %1280 = vmatpush1.bf16.msra.mxu0 %v1279_v63 }
 0x1b1   : > { %1286 = vmatprep.subr.bf16.mxu1 %v1285_v1 }
 0x1b2   : > { %1288 = vmatpush1.bf16.msra.mxu1 %v1287_v9 }
 0x1b3   : > { %1245 = vmatmul.mubr.msk.f32.vlgmr.msra.gmra.mrb[8].mxu0 %vm473_vm0, %v1237_v55 }
 0x1b4   : > { %840 = vmatprep.mubr.f32.mxu0 %v1422_v18 }
 0x1b5   : > { %1249 = vmatmul.mubr.msk.f32.vlgmr.msra.gmra.mrb[8].mxu1 %vm473_vm0, %v1237_v55 }
 0x1b6   : > { %929 = vmatprep.mubr.f32.mxu1 %v1422_v18 }
 0x1b7   : > { %1246 = vmatmul.mubr.msk.f32.gmra.mrb[10].mxu0 %vm473_vm0, %v1238_v59 }
 0x1b8   : > { %846 = vmatprep.mubr.f32.mxu0 %v1422_v18 }
 0x1b9   : > { %1250 = vmatmul.mubr.msk.f32.gmra.mrb[10].mxu1 %vm473_vm0, %v1238_v59 }
 0x1ba   : > { %935 = vmatprep.mubr.f32.mxu1 %v1422_v18 }
 0x1bb   : > { %1247 = vmatmul.mubr.msk.f32.gmra.mrb[12].mxu0 %vm473_vm0, %v1239_v61 }
 0x1bc   : > { %852 = vmatprep.mubr.f32.mxu0 %v1422_v18 }
 0x1bd   : > { %1251 = vmatmul.mubr.msk.f32.gmra.mrb[12].mxu1 %vm473_vm0, %v1239_v61 }
 0x1be   : > { %941 = vmatprep.mubr.f32.mxu1 %v1422_v18 }
 0x1bf   : > { %1248 = vmatmul.mubr.msk.f32.gmra.mrb[14].mxu0 %vm473_vm0, %v1240_v3 }
 0x1c0   : > { %1086 = vmatprep.mubr.f32.mxu0 %v1422_v18 }
 0x1c1   : > { %1252 = vmatmul.mubr.msk.f32.gmra.mrb[14].mxu1 %vm473_vm0, %v1240_v3 }
 0x1c2   : > { %1157 = vmatprep.mubr.f32.mxu1 %v1422_v18 }
 0x286   : > { %v836_v10 = vpop.f32.mrb[8].mxu0 }
 0x287   : > { %v837_v11 = vadd.f32 %v836_v10, %v741_v6  ;;  %v838_v13 = vpop.f32.mrb[9].mxu0 }
 0x288   : > { %v925_v0 = vpop.f32.mrb[8].mxu1  ;;  %v839_v15 = vadd.f32 %v838_v13, %v741_v6 }
 0x289   : > { %v1656_v16 = vmul.f32 0.5, %v837_v11  ;;  %v926_v14 = vadd.f32 %v925_v0, %v741_v6  ;;  %v927_v5 = vpop.f32.mrb[9].mxu1 }
 0x28a   : > { %v1658_v2 = vmul.f32 0.5, %v839_v15  ;;  %v928_v8 = vadd.f32 %v927_v5, %v741_v6  ;;  %v842_v12 = vpop.f32.mrb[10].mxu0 }
 0x28b   : > { %1381 = vtanh.f32 %v1656_v16  ;;  %v1661_v19 = vmul.f32 0.5, %v926_v14  ;;  %v843_v18 = vadd.f32 %v842_v12, %v746_v17  ;;  %v844_v20 = vpop.f32.mrb[11].mxu0 }
 0x28c   : > { %1383 = vtanh.f32 %v1658_v2  ;;  %v1664_v21 = vmul.f32 0.5, %v928_v8  ;;  %v931_v22 = vpop.f32.mrb[10].mxu1  ;;  %v845_v23 = vadd.f32 %v844_v20, %v746_v17 }
 0x28d   : > { %1385 = vtanh.f32 %v1661_v19  ;;  %v952_v24 = vmul.f32 0.5, %v843_v18  ;;  %v932_v25 = vadd.f32 %v931_v22, %v746_v17  ;;  %v933_v27 = vpop.f32.mrb[11].mxu1 }
 0x28e   : > { %1387 = vtanh.f32 %v1664_v21  ;;  %v953_v29 = vmul.f32 0.5, %v845_v23  ;;  %v934_v31 = vadd.f32 %v933_v27, %v746_v17  ;;  %v848_v32 = vpop.f32.mrb[12].mxu0 }
 0x28f   : > { %1389 = vtanh.f32 %v952_v24  ;;  %v954_v34 = vmul.f32 0.5, %v932_v25  ;;  %v849_v35 = vadd.f32 %v848_v32, %v751_v28  ;;  %v850_v37 = vpop.f32.mrb[13].mxu0 }
 0x290   : > { %1391 = vtanh.f32 %v953_v29  ;;  %v955_v38 = vmul.f32 0.5, %v934_v31  ;;  %v937_v40 = vpop.f32.mrb[12].mxu1  ;;  %v851_v42 = vadd.f32 %v850_v37, %v751_v28 }
 0x291   : > { %1393 = vtanh.f32 %v954_v34  ;;  %v1668_v43 = vmul.f32 0.5, %v849_v35  ;;  %v938_v45 = vadd.f32 %v937_v40, %v751_v28  ;;  %v939_v48 = vpop.f32.mrb[13].mxu1 }
 0x292   : > { %1395 = vtanh.f32 %v955_v38  ;;  %v1670_v39 = vmul.f32 0.5, %v851_v42  ;;  %v940_v50 = vadd.f32 %v939_v48, %v751_v28  ;;  %v854_v51 = vpop.f32.mrb[14].mxu0 }
 0x293   : > { %1397 = vtanh.f32 %v1668_v43  ;;  %v1673_v30 = vmul.f32 0.5, %v938_v45  ;;  %v855_v44 = vadd.f32 %v854_v51, %v756_v26  ;;  %v856_v53 = vpop.f32.mrb[15].mxu0 }
 0x294   : > { %1399 = vtanh.f32 %v1670_v39  ;;  %v1676_v54 = vmul.f32 0.5, %v940_v50  ;;  %v943_v33 = vpop.f32.mrb[14].mxu1  ;;  %v857_v56 = vadd.f32 %v856_v53, %v756_v26 }
 0x295   : > { %v1382_v49 = vpop.eup %1381  ;;  %1401 = vtanh.f32 %v1673_v30  ;;  %v960_v36 = vmul.f32 0.5, %v855_v44  ;;  %v944_v52 = vadd.f32 %v943_v33, %v756_v26  ;;  %v945_v57 = vpop.f32.mrb[15].mxu1 }
 0x296   : > { %v1384_v58 = vpop.eup %1383  ;;  %1403 = vtanh.f32 %v1676_v54  ;;  %v961_v41 = vmul.f32 0.5, %v857_v56  ;;  %v946_v60 = vadd.f32 %v945_v57, %v756_v26  ;;  %v980_v47 = vadd.f32 1.0, %v1382_v49 }
 0x297   : > { %v1386_v62 = vpop.eup %1385  ;;  %1405 = vtanh.f32 %v960_v36  ;;  %v962_v63 = vmul.f32 0.5, %v944_v52  ;;  %v981_v9 = vadd.f32 1.0, %v1384_v58 }
 0x298   : > { %v1388_v46 = vpop.eup %1387  ;;  %1407 = vtanh.f32 %v961_v41  ;;  %v963_v4 = vmul.f32 0.5, %v946_v60  ;;  %v982_v55 = vadd.f32 1.0, %v1386_v62  ;;  %v996_v11 = vmul.f32 %v980_v47, %v1656_v16 }
 0x299   : > { %v1390_v7 = vpop.eup %1389  ;;  %1409 = vtanh.f32 %v962_v63  ;;  %v983_v3 = vadd.f32 1.0, %v1388_v46  ;;  %v997_v14 = vmul.f32 %v981_v9, %v1658_v2 }
 0x29a   : > { %v1392_v1 = vpop.eup %1391  ;;  %v984_v59 = vadd.f32 1.0, %v1390_v7  ;;  %1411 = vtanh.f32 %v963_v4  ;;  %v998_v12 = vmul.f32 %v982_v55, %v1661_v19 }
 0x29b   : > { %v1394_v61 = vpop.eup %1393  ;;  %v985_v6 = vadd.f32 1.0, %v1392_v1  ;;  %v999_v23 = vmul.f32 %v983_v3, %v1664_v21 }
 0x29c   : > { %v1396_v10 = vpop.eup %1395  ;;  %v1000_v13 = vmul.f32 %v984_v59, %v952_v24  ;;  %v986_v0 = vadd.f32 1.0, %v1394_v61 }
 0x29d   : > { %v1398_v15 = vpop.eup %1397  ;;  %v1001_v5 = vmul.f32 %v985_v6, %v953_v29  ;;  %v987_v17 = vadd.f32 1.0, %v1396_v10 }
 0x29e   : > { %v1400_v8 = vpop.eup %1399  ;;  %v1291_v18 = vpack.c.bf16 %v1000_v13, %v996_v11  ;;  %v1002_v20 = vmul.f32 %v986_v0, %v954_v34  ;;  %v988_v16 = vadd.f32 1.0, %v1398_v15 }
 0x29f   : > { %v1402_v22 = vpop.eup %1401  ;;  %v1003_v25 = vmul.f32 %v987_v17, %v955_v38  ;;  %v1289_v27 = vpack.c.bf16 %v1001_v5, %v997_v14  ;;  %v989_v32 = vadd.f32 1.0, %v1400_v8 }
 0x2a0   : > { %v1404_v28 = vpop.eup %1403  ;;  %v1299_v31 = vpack.c.bf16 %v1002_v20, %v998_v12  ;;  %v990_v29 = vadd.f32 1.0, %v1402_v22  ;;  %v1004_v21 = vmul.f32 %v988_v16, %v1668_v43  ;;  %v1012_v43 = vld [vmem:[%s1705_s5] sm:$0xff] }
 0x2a1   : > { %v1406_v24 = vpop.eup %1405  ;;  %1290 = vmatprep.subr.bf16.mxu0 %v1289_v27  ;;  %v1297_v35 = vpack.c.bf16 %v1003_v25, %v999_v23  ;;  %v991_v19 = vadd.f32 1.0, %v1404_v28  ;;  %v1005_v48 = vmul.f32 %v989_v32, %v1670_v39  ;;  %v1017_v39 = vpop.permute.xlu0 %1016 }
 0x2a2   : > { %v1408_v2 = vpop.eup %1407  ;;  %v992_v37 = vadd.f32 1.0, %v1406_v24  ;;  %1292 = vmatpush1.bf16.msra.mxu0 %v1291_v18  ;;  %v1006_v51 = vmul.f32 %v990_v29, %v1673_v30 }
 0x2a3   : > { %v1410_v40 = vpop.eup %1409  ;;  %v993_v42 = vadd.f32 1.0, %v1408_v2  ;;  %1298 = vmatprep.subr.bf16.mxu1 %v1297_v35  ;;  %v1007_v33 = vmul.f32 %v991_v19, %v1676_v54 }
 0x2a4   : > { %v1412_v34 = vpop.eup %1411  ;;  %v1008_v38 = vmul.f32 %v992_v37, %v960_v36  ;;  %v994_v45 = vadd.f32 1.0, %v1410_v40  ;;  %1300 = vmatpush1.bf16.msra.mxu1 %v1299_v31 }
 0x2a5   : > { %v1009_v26 = vmul.f32 %v993_v42, %v961_v41  ;;  %v995_v50 = vadd.f32 1.0, %v1412_v34 }
 0x2a6   : > { %v1295_v44 = vpack.c.bf16 %v1008_v38, %v1004_v21  ;;  %v1010_v53 = vmul.f32 %v994_v45, %v962_v63 }
 0x2a7   : > { %v1011_v56 = vmul.f32 %v995_v50, %v963_v4  ;;  %v1293_v49 = vpack.c.bf16 %v1009_v26, %v1005_v48 }
 0x2a8   : > { %v1303_v52 = vpack.c.bf16 %v1010_v53, %v1006_v51 }
 0x2a9   : > { %1294 = vmatprep.subr.bf16.mxu0 %v1293_v49  ;;  %v1301_v57 = vpack.c.bf16 %v1011_v56, %v1007_v33 }
 0x2aa   : > { %1296 = vmatpush1.bf16.msra.mxu0 %v1295_v44 }
 0x2ab   : > { %1302 = vmatprep.subr.bf16.mxu1 %v1301_v57 }
 0x2ac   : > { %1304 = vmatpush1.bf16.msra.mxu1 %v1303_v52 }
 0x2ad   : > { %1253 = vmatmul.mubr.msk.f32.vlgmr.msra.gmra.mrb[16].mxu0 %vm473_vm0, %v1012_v43 }
 0x2af   : > { %1254 = vmatmul.mubr.msk.f32.vlgmr.msra.gmra.mrb[16].mxu1 %vm473_vm0, %v1012_v43 }
 0x380   : > { %v1088_v30 = vpop.f32.mrb[16].mxu0 }
 0x381   : > { %v1089_v54 = vadd.f32 %v1088_v30, %v1017_v39  ;;  %v1090_v36 = vpop.f32.mrb[17].mxu0 }
 0x382   : > { %v1159_v58 = vpop.f32.mrb[16].mxu1  ;;  %v1091_v41 = vadd.f32 %v1090_v36, %v1017_v39 }
 0x383   : > { %1164 = vst [vmem:[%s277_s25] sm:$0xff] %v1089_v54  ;;  %v1160_v60 = vadd.f32 %v1159_v58, %v1017_v39  ;;  %v1161_v62 = vpop.f32.mrb[17].mxu1 }
 0x384   : > { %1165 = vst [vmem:[%s277_s25 + $0x8] sm:$0xff] %v1091_v41  ;;  %v1162_v63 = vadd.f32 %v1161_v62, %v1017_v39 }
 0x385   : > { %1166 = vst [vmem:[%s277_s25 + $0x10] sm:$0xff] %v1160_v60 }
 0x386   : > { %1167 = vst [vmem:[%s277_s25 + $0x18] sm:$0xff] %v1162_v63 }
 0x387 PF: > { %s17_s24 = sadd.s32 1, %s1419_s24  }
 0x388   : > { %p14_p4 = scmp.ge.s32.totalorder %s17_s24, 4  }
 0x38a   :  { %16 = sbr.rel (!%p14_p4) target bundleno = 1 (0x1), region = 80 }

</bundles_post_ra>
